<compile_context>
chip_gen: v7x
topology: tpu7x:2x2x1
jax: 0.10.0
libtpu: 0.0.40
codegen_flags: <defaults>
</compile_context>

<pallas_src>
import jax
import jax.numpy as jnp
from jax.experimental import pallas as pl
from jax.experimental.pallas import tpu as pltpu


def _round_up(a: int, b: int) -> int:
    return (a + b - 1) // b * b


# ----------------------------------------------------------------------------
# Kernels
# ----------------------------------------------------------------------------
def _mlp_kernel_single(x_ref, wg_ref, wu_ref, wd_ref, o_ref):
    # Single reduction step (ti == I): no accumulator scratch needed.
    x = x_ref[...]
    gate = jnp.dot(x, wg_ref[...], preferred_element_type=jnp.float32)
    up = jnp.dot(x, wu_ref[...], preferred_element_type=jnp.float32)
    # SiluAndMul in f32, narrow early to the weight dtype before the down proj.
    h = (gate * jax.nn.sigmoid(gate) * up).astype(wd_ref.dtype)
    o_ref[...] = jnp.dot(h, wd_ref[...],
                         preferred_element_type=jnp.float32).astype(o_ref.dtype)


def _mlp_kernel_multi(x_ref, wg_ref, wu_ref, wd_ref, o_ref, acc_ref):
    # x_ref:   (tm, H)      token tile (resident across the I axis)
    # wg_ref:  (H, ti)      gate-projection column tile
    # wu_ref:  (H, ti)      up-projection column tile
    # wd_ref:  (ti, H)      down-projection row tile
    # o_ref:   (tm, H)      output tile
    # acc_ref: (tm, H) f32  accumulator across the I (reduction) axis
    i = pl.program_id(1)

    @pl.when(i == 0)
    def _():
        acc_ref[...] = jnp.zeros_like(acc_ref)

    x = x_ref[...]
    gate = jnp.dot(x, wg_ref[...], preferred_element_type=jnp.float32)
    up = jnp.dot(x, wu_ref[...], preferred_element_type=jnp.float32)
    h = (gate * jax.nn.sigmoid(gate) * up).astype(wd_ref.dtype)
    acc_ref[...] += jnp.dot(h, wd_ref[...], preferred_element_type=jnp.float32)

    @pl.when(i == pl.num_programs(1) - 1)
    def _():
        o_ref[...] = acc_ref[...].astype(o_ref.dtype)


# ----------------------------------------------------------------------------
# Tile sizing helpers
# ----------------------------------------------------------------------------
def _vmem_info():
    # Returns (physical capacity, scoped limit to request).
    try:
        cap = int(pltpu.get_tpu_info().vmem_capacity_bytes)
    except Exception:
        cap = 128 * 1024 * 1024
    # v5e/v6e: 128 MiB physical -> 96 MiB scoped.  v7x: 64 MiB -> 48 MiB.
    return cap, min(cap * 3 // 4, 96 * 1024 * 1024)


def _ti_candidates(I: int):
    # Multiples of 128 that divide I, ascending.  Empty if I % 128 != 0.
    return [d for d in range(128, I + 1, 128) if I % d == 0]


def _fits_vmem(tm, ti, H, dt_bytes, n_i, limit):
    # Double-buffered input/output tiles + f32 accumulator + in-flight f32
    # matmul intermediates; leave headroom for compiler-internal scratch.
    bufs = 2 * (tm * H + 2 * H * ti + ti * H + tm * H) * dt_bytes
    acc = tm * H * 4 if n_i > 1 else 0
    inter = 2 * tm * ti * 4 + tm * ti * dt_bytes + tm * H * 4
    return bufs + acc + inter <= int(limit * 0.85)


# ----------------------------------------------------------------------------
# Wrapper
# ----------------------------------------------------------------------------
def qwen3_moe_mlp(x, w_gate_up, w_down, *, tm=None, ti=None):
    """Fused SwiGLU MLP.

    x:         (T, H)
    w_gate_up: (H, 2*I)  pre-transposed merged weight: gate cols then up cols
    w_down:    (I, H)    pre-transposed down projection
    returns:   (T, H)
    """
    T, H = x.shape
    two_i = w_gate_up.shape[1]
    I = two_i // 2
    assert two_i == 2 * I and w_gate_up.shape[0] == H and w_down.shape == (I, H)

    dt_bytes = jnp.dtype(x.dtype).itemsize
    sublane = 16 if dt_bytes == 2 else 8
    vmem_cap, vmem_limit = _vmem_info()

    # --- token tile: large enough to amortize the per-token-tile weight
    #     stream (weights are re-fetched every token tile) -------------------
    if tm is None:
        tm = 512 if vmem_cap <= 64 * 1024 * 1024 else 768
    tm = _round_up(max(sublane, min(tm, _round_up(T, sublane))), sublane)

    # --- intermediate (reduction) tile: largest multiple-of-128 divisor of I
    #     that fits the target and the VMEM budget --------------------------
    cands = _ti_candidates(I)
    if not cands:
        # TODO(synk): I not a multiple of 128 - single reduction step with
        # per-call gate/up slices; pad I at weight-load time to avoid this.
        ti = I
        cands = [I]
        split_weights = True
    else:
        target = ti if ti is not None else min(I, 1024)
        below = [d for d in cands if d <= target]
        ti = below[-1] if below else cands[0]
        split_weights = False

    # Shrink ti first (keeps tm large for arithmetic intensity), then tm.
    idx = cands.index(ti)
    while not _fits_vmem(tm, ti, H, dt_bytes, I // ti, vmem_limit) and idx > 0:
        idx -= 1
        ti = cands[idx]
    while not _fits_vmem(tm, ti, H, dt_bytes, I // ti, vmem_limit) and tm > sublane:
        tm = max(sublane, _round_up(tm // 2, sublane))
    n_i = I // ti

    # --- weight views: pass the merged weight twice (no re-layout, no copy) -
    if split_weights:
        wg_arr = w_gate_up[:, :I]
        wu_arr = w_gate_up[:, I:]
        up_off = 0
    else:
        wg_arr = w_gate_up
        wu_arr = w_gate_up
        up_off = n_i          # up columns start at block index n_i of (H, 2I)

    # --- thin token padding (<= tm - 1 rows; ~sublane for decode) ----------
    T_pad = _round_up(T, tm)
    x_in = jnp.pad(x, ((0, T_pad - T), (0, 0))) if T_pad != T else x
    grid_t = T_pad // tm

    # --- advisory cost: weights are streamed once per token tile -----------
    w_bytes = (2 * H * I * jnp.dtype(w_gate_up.dtype).itemsize
               + I * H * jnp.dtype(w_down.dtype).itemsize)
    cost = pl.CostEstimate(
        flops=6 * T_pad * H * I,                       # gate + up + down matmuls
        transcendentals=T_pad * I,                     # sigmoid
        bytes_accessed=2 * T_pad * H * dt_bytes + w_bytes * grid_t,
    )

    if n_i == 1:
        # Fast path: no f32 accumulator scratch, 1-D grid.
        grid = (grid_t,)
        kernel = _mlp_kernel_single
        in_specs = [
            pl.BlockSpec((tm, H), lambda t: (t, 0)),                  # x tile
            pl.BlockSpec((H, ti), lambda t: (0, 0)),                  # gate cols
            pl.BlockSpec((H, ti), lambda t, _o=up_off: (0, _o)),      # up cols
            pl.BlockSpec((ti, H), lambda t: (0, 0)),                  # down rows
        ]
        out_specs = pl.BlockSpec((tm, H), lambda t: (t, 0))
        scratch = []
        dims = ("parallel",)
    else:
        grid = (grid_t, n_i)  # reduction axis last, "arbitrary"
        kernel = _mlp_kernel_multi
        in_specs = [
            pl.BlockSpec((tm, H), lambda t, i: (t, 0)),               # x tile
            pl.BlockSpec((H, ti), lambda t, i: (0, i)),               # gate cols
            pl.BlockSpec((H, ti), lambda t, i, _o=up_off: (0, i + _o)),  # up cols
            pl.BlockSpec((ti, H), lambda t, i: (i, 0)),               # down rows
        ]
        out_specs = pl.BlockSpec((tm, H), lambda t, i: (t, 0))
        scratch = [pltpu.VMEM((tm, H), jnp.float32)]
        dims = ("parallel", "arbitrary")
        # NOTE: if profiling still shows exposed weight DMAs at these tm/ti
        # (v6e near the roofline), bump only the weight specs to
        # pipeline_mode=pl.Buffered(3); not done unconditionally since extra
        # buffers add VMEM pressure without adding HBM bandwidth.

    out = pl.pallas_call(
        kernel,
        out_shape=jax.ShapeDtypeStruct((T_pad, H), x.dtype),
        grid_spec=pltpu.PrefetchScalarGridSpec(
            num_scalar_prefetch=0,
            grid=grid,
            in_specs=in_specs,
            out_specs=out_specs,
            scratch_shapes=scratch,
        ),
        compiler_params=pltpu.CompilerParams(
            dimension_semantics=dims,
            vmem_limit_bytes=vmem_limit,
        ),
        cost_estimate=cost,
    )(x_in, wg_arr, wu_arr, w_down)

    return out[:T] if T_pad != T else out


# ----------------------------------------------------------------------------
# Reference + self-test
# ----------------------------------------------------------------------------
def _reference(x, w_gate_up, w_down):
    """Pure-JAX reference matching the kernel's bf16 narrowing of h."""
    xf = x.astype(jnp.float32)
    I = w_gate_up.shape[1] // 2
    gate = xf @ w_gate_up[:, :I].astype(jnp.float32)
    up = xf @ w_gate_up[:, I:].astype(jnp.float32)
    h = (gate * jax.nn.sigmoid(gate)) * up
    h = h.astype(w_down.dtype).astype(jnp.float32)
    return (h @ w_down.astype(jnp.float32)).astype(x.dtype)


if __name__ == "__main__":
    # Small shapes; T deliberately NOT a tile multiple to exercise padding.
    num_tokens = 50
    hidden_size = 128
    intermediate_size = 512
    dtype = jnp.bfloat16

    key = jax.random.PRNGKey(0)
    kx, kg, ku, kd = jax.random.split(key, 4)

    x = jax.random.normal(kx, (num_tokens, hidden_size), jnp.float32)
    w_gate = jax.random.normal(kg, (hidden_size, intermediate_size), jnp.float32) * 0.02
    w_up = jax.random.normal(ku, (hidden_size, intermediate_size), jnp.float32) * 0.02
    w_down = jax.random.normal(kd, (intermediate_size, hidden_size), jnp.float32) * 0.02

    x = x.astype(dtype)
    # Merged gate_up weight, pre-transposed to (H, 2I): gate cols then up cols
    # (matches vLLM's MergedColumnParallelLinear layout, transposed).
    w_gate_up = jnp.concatenate([w_gate, w_up], axis=1).astype(dtype)
    w_down = w_down.astype(dtype)

    ref = _reference(x, w_gate_up, w_down)

    # 1) Multi-step reduction path (n_i > 1, f32 accumulator) + ragged T.
    out_multi = jax.block_until_ready(
        qwen3_moe_mlp(x, w_gate_up, w_down, tm=32, ti=128))
    # 2) Auto-tiled path (ti == I -> n_i == 1, no accumulator scratch).
    out_auto = jax.block_until_ready(qwen3_moe_mlp(x, w_gate_up, w_down))

    for out in (out_multi, out_auto):
        assert out.shape == (num_tokens, hidden_size)
        assert jnp.allclose(out.astype(jnp.float32), ref.astype(jnp.float32),
                            atol=2e-3, rtol=2e-2), "mismatch vs reference"

    print("KERNEL_OK")
</pallas_src>

<mosaic_0001>
module attributes {stable_mosaic.version = 11 : i64} {
  func.func @_mlp_kernel_multi(%arg0: i32, %arg1: i32, %arg2: memref<32x128xbf16, #tpu.memory_space<vmem>>, %arg3: memref<128x128xbf16, #tpu.memory_space<vmem>>, %arg4: memref<128x128xbf16, #tpu.memory_space<vmem>>, %arg5: memref<128x128xbf16, #tpu.memory_space<vmem>>, %arg6: memref<32x128xbf16, #tpu.memory_space<vmem>>, %arg7: memref<32x128xf32, #tpu.memory_space<vmem>>) attributes {dimension_semantics = [#tpu.dimension_semantics<parallel>, #tpu.dimension_semantics<arbitrary>], iteration_bounds = array<i64: 2, 4>, scalar_prefetch = 0 : i64, scratch_operands = 1 : i64, tpu.core_type = #tpu.core_type<tc>, window_params = [{transform_indices = @transform_0, window_bounds = array<i64: 32, 128>}, {transform_indices = @transform_1, window_bounds = array<i64: 128, 128>}, {transform_indices = @transform_2, window_bounds = array<i64: 128, 128>}, {transform_indices = @transform_3, window_bounds = array<i64: 128, 128>}, {transform_indices = @transform_4, window_bounds = array<i64: 32, 128>}]} {
    %c0_i32 = arith.constant 0 : i32
    %0 = arith.cmpi eq, %arg1, %c0_i32 : i32
    %1 = arith.extui %0 : i1 to i32
    %c0_i32_0 = arith.constant 0 : i32
    %2 = arith.cmpi ne, %1, %c0_i32_0 : i32
    scf.if %2 {
      %cst_16 = arith.constant 0.000000e+00 : f32
      %24 = vector.broadcast %cst_16 : f32 to vector<32x128xf32>
      %c0_17 = arith.constant 0 : index
      %c0_18 = arith.constant 0 : index
      %25 = vector.load %arg7[%c0_17, %c0_18] : memref<32x128xf32, #tpu.memory_space<vmem>>, vector<32x128xf32>
      tpu.vector_store %arg7[%c0_17, %c0_18], %24 {strides = array<i32>} : memref<32x128xf32, #tpu.memory_space<vmem>>, vector<32x128xf32>,
    } else {
    }
    %c0 = arith.constant 0 : index
    %c0_1 = arith.constant 0 : index
    %3 = vector.load %arg2[%c0, %c0_1] : memref<32x128xbf16, #tpu.memory_space<vmem>>, vector<32x128xbf16>
    %c0_2 = arith.constant 0 : index
    %c0_3 = arith.constant 0 : index
    %4 = vector.load %arg3[%c0_2, %c0_3] : memref<128x128xbf16, #tpu.memory_space<vmem>>, vector<128x128xbf16>
    %cst = arith.constant dense<0.000000e+00> : vector<32x128xf32>
    %5 = tpu.matmul %3, %4, %cst {dimension_numbers = #tpu.dot_dimension_numbers<[1], [0], [0], [1], [0, 0, 1, 1], [], []>} : vector<32x128xbf16>, vector<128x128xbf16>, vector<32x128xf32> -> vector<32x128xf32>
    %c0_4 = arith.constant 0 : index
    %c0_5 = arith.constant 0 : index
    %6 = vector.load %arg4[%c0_4, %c0_5] : memref<128x128xbf16, #tpu.memory_space<vmem>>, vector<128x128xbf16>
    %cst_6 = arith.constant dense<0.000000e+00> : vector<32x128xf32>
    %7 = tpu.matmul %3, %6, %cst_6 {dimension_numbers = #tpu.dot_dimension_numbers<[1], [0], [0], [1], [0, 0, 1, 1], [], []>} : vector<32x128xbf16>, vector<128x128xbf16>, vector<32x128xf32> -> vector<32x128xf32>
    %8 = arith.negf %5 : vector<32x128xf32>
    %9 = math.exp %8 : vector<32x128xf32>
    %cst_7 = arith.constant 1.000000e+00 : f32
    %10 = vector.broadcast %cst_7 : f32 to vector<32x128xf32>
    %11 = arith.addf %10, %9 : vector<32x128xf32>
    %12 = arith.divf %10, %11 : vector<32x128xf32>
    %13 = arith.mulf %5, %12 : vector<32x128xf32>
    %14 = arith.mulf %13, %7 : vector<32x128xf32>
    %15 = arith.truncf %14 : vector<32x128xf32> to vector<32x128xbf16>
    %c0_8 = arith.constant 0 : index
    %c0_9 = arith.constant 0 : index
    %16 = vector.load %arg7[%c0_8, %c0_9] : memref<32x128xf32, #tpu.memory_space<vmem>>, vector<32x128xf32>
    %c0_10 = arith.constant 0 : index
    %c0_11 = arith.constant 0 : index
    %17 = vector.load %arg5[%c0_10, %c0_11] : memref<128x128xbf16, #tpu.memory_space<vmem>>, vector<128x128xbf16>
    %cst_12 = arith.constant dense<0.000000e+00> : vector<32x128xf32>
    %18 = tpu.matmul %15, %17, %cst_12 {dimension_numbers = #tpu.dot_dimension_numbers<[1], [0], [0], [1], [0, 0, 1, 1], [], []>} : vector<32x128xbf16>, vector<128x128xbf16>, vector<32x128xf32> -> vector<32x128xf32>
    %19 = arith.addf %16, %18 : vector<32x128xf32>
    %c0_13 = arith.constant 0 : index
    %c0_14 = arith.constant 0 : index
    %20 = vector.load %arg7[%c0_13, %c0_14] : memref<32x128xf32, #tpu.memory_space<vmem>>, vector<32x128xf32>
    tpu.vector_store %arg7[%c0_13, %c0_14], %19 {strides = array<i32>} : memref<32x128xf32, #tpu.memory_space<vmem>>, vector<32x128xf32>,
    %c3_i32 = arith.constant 3 : i32
    %21 = arith.cmpi eq, %arg1, %c3_i32 : i32
    %22 = arith.extui %21 : i1 to i32
    %c0_i32_15 = arith.constant 0 : i32
    %23 = arith.cmpi ne, %22, %c0_i32_15 : i32
    scf.if %23 {
      %c0_16 = arith.constant 0 : index
      %c0_17 = arith.constant 0 : index
      %24 = vector.load %arg7[%c0_16, %c0_17] : memref<32x128xf32, #tpu.memory_space<vmem>>, vector<32x128xf32>
      %25 = arith.truncf %24 : vector<32x128xf32> to vector<32x128xbf16>
      %c0_18 = arith.constant 0 : index
      %c0_19 = arith.constant 0 : index
      %26 = vector.load %arg6[%c0_18, %c0_19] : memref<32x128xbf16, #tpu.memory_space<vmem>>, vector<32x128xbf16>
      tpu.vector_store %arg6[%c0_18, %c0_19], %25 {strides = array<i32>} : memref<32x128xbf16, #tpu.memory_space<vmem>>, vector<32x128xbf16>,
    } else {
    }
    return
  }
  func.func @transform_0(%arg0: i32, %arg1: i32) -> (i32, i32) {
    %c0_i32 = arith.constant 0 : i32
    %c0_i32_0 = arith.constant 0 : i32
    return %arg0, %c0_i32 : i32, i32
  }
  func.func @transform_1(%arg0: i32, %arg1: i32) -> (i32, i32) {
    %c0_i32 = arith.constant 0 : i32
    %c0_i32_0 = arith.constant 0 : i32
    return %c0_i32, %arg1 : i32, i32
  }
  func.func @transform_2(%arg0: i32, %arg1: i32) -> (i32, i32) {
    %c4_i32 = arith.constant 4 : i32
    %0 = arith.addi %arg1, %c4_i32 : i32
    %c0_i32 = arith.constant 0 : i32
    %c0_i32_0 = arith.constant 0 : i32
    return %c0_i32, %0 : i32, i32
  }
  func.func @transform_3(%arg0: i32, %arg1: i32) -> (i32, i32) {
    %c0_i32 = arith.constant 0 : i32
    %c0_i32_0 = arith.constant 0 : i32
    return %arg1, %c0_i32 : i32, i32
  }
  func.func @transform_4(%arg0: i32, %arg1: i32) -> (i32, i32) {
    %c0_i32 = arith.constant 0 : i32
    %c0_i32_0 = arith.constant 0 : i32
    return %arg0, %c0_i32 : i32, i32
  }
}

</mosaic_0001>

<bundles_post_ra>
// kernel: tpu_custom_call.1
= control target key start
LH: loop header
LB: loop body
LE: loop exit
PB: predicated region body
PF: predicated region fallthrough
CT: control target
= control target key end

     0   :  { %s2148_s0 = inlined_call_operand.hbm [shape: bf16[64,128], index: 0, kind: input, shape index: {}]   ;;  %s2149_s1 = inlined_call_operand.hbm [shape: bf16[128,1024], index: 1, kind: input, shape index: {}]   ;;  %s2150_s2 = inlined_call_operand.hbm [shape: bf16[128,1024], index: 2, kind: input, shape index: {}]   ;;  %s2151_s3 = inlined_call_operand.hbm [shape: bf16[512,128], index: 3, kind: input, shape index: {}]   ;;  %s2152_s4 = inlined_call_operand.hbm [shape: bf16[64,128], index: 4, kind: output, shape index: {}]  }
   0x1   :  { %2179 = sst [smem:[#allocation31_spill]] %s2148_s0 }
   0x2   :  { %2180 = sst [smem:[#allocation32_spill]] %s2149_s1 }
   0x3   :  { %2181 = sst [smem:[#allocation33_spill]] %s2150_s2 }
   0x4   :  { %2182 = sst [smem:[#allocation34_spill]] %s2151_s3 }
   0x5   :  { %2183 = sst [smem:[#allocation35_spill]] %s2152_s4 }
   0x6   :  { %9 = vsyncpa [#allocation4], 0 }
   0x7   :  { %11 = vsyncpa [#allocation4 + $0x1], 0 }
   0x8   :  { %12 = vsyncpa [#allocation7], 0 }
   0x9   :  { %14 = vsyncpa [#allocation7 + $0x1], 0 }
   0xa   :  { %15 = vsyncpa [#allocation10], 0 }
   0xb   :  { %17 = vsyncpa [#allocation10 + $0x1], 0 }
   0xc   :  { %18 = vsyncpa [#allocation5], 0 }
   0xd   :  { %20 = vsyncpa [#allocation5 + $0x1], 0  ;;  %s1628_s15 = smov 0   ;;  %s1630_s16 = smov 0  }
   0xe   :  { %s1632_s17 = smov 0   ;;  %s1634_s18 = smov 0  }
   0xf   :  { %s1636_s19 = smov 0   ;;  %s1638_s20 = smov 0  }
  0x10   :  { %s1640_s21 = smov 0   ;;  %s1642_s22 = smov 0  }
  0x11   :  { %s1644_s23 = smov 0   ;;  %s1646_s24 = smov 0  }
  0x12   :  { %s1648_s25 = smov 0   ;;  %s1650_s26 = smov 0  }
  0x13   :  { %s1652_s27 = smov 0   ;;  %s1654_s28 = smov 0  }
  0x14 LB: > { %2184 = sst [smem:[#allocation17_spill]] %s1546_s17  ;;  %p2169_p0 = scmp.eq.s32.totalorder %s1590_s28, 0  ;;  %s1590_s28 = sphi %s1654_s28, %s26_s28   ;;  %s1586_s27 = sphi %s1652_s27, %s2258_s27   ;;  %s1582_s26 = sphi %s1650_s26, %s2257_s26   ;;  %s1578_s25 = sphi %s1648_s25, %s2246_s25   ;;  %s1574_s24 = sphi %s1646_s24, %s2256_s24   ;;  %s1570_s23 = sphi %s1644_s23, %s2245_s23   ;;  %s1566_s22 = sphi %s1642_s22, %s2255_s22   ;;  %s1562_s21 = sphi %s1640_s21, %s2254_s21   ;;  %s1558_s20 = sphi %s1638_s20, %s2253_s20   ;;  %s1554_s19 = sphi %s1636_s19, %s2252_s19   ;;  %s1550_s18 = sphi %s1634_s18, %s2251_s18   ;;  %s1546_s17 = sphi %s1632_s17, %s2242_s17   ;;  %s1542_s16 = sphi %s1630_s16, %s2250_s16   ;;  %s1538_s15 = sphi %s1628_s15, %s2249_s15  }
  0x15   : > { %2185 = sst [smem:[#allocation18_spill]] %s1570_s23  ;;  %p78_p1 = scmp.ne.s32.totalorder %s1558_s20, %s1554_s19 }
  0x16   : > { %2186 = sst [smem:[#allocation19_spill]] %s1574_s24  ;;  %p2155_p4 = scmp.lt.s32.totalorder %s1590_s28, 8 }
  0x17   : > { %2187 = sst [smem:[#allocation20_spill]] %s1578_s25  ;;  %p80_p3 = por %p78_p1, %p2169_p0 }
  0x18   : > { %2188 = sst [smem:[#allocation21_spill]] %s1586_s27  ;;  %s209_s5 = sand.u32 1, %s1590_s28  }
  0x19   : > { %s2153_s6 = sand.u32 1, %s1558_s20   ;;  %s961_s8 = sshll.u32 %s1582_s26, 6 }
  0x1a   : > { %s1712_s7 = sshll.u32 %s2153_s6, 6  ;;  %s2190_s1 = sld [smem:[#allocation32_spill]] }
  0x1b   : > { %2189 = sst [smem:[#allocation22_spill]] %s1712_s7  ;;  %s213_s12 = scalar_lea.vmem [#allocation6], %s1712_s7 }
  0x1c   : > { %s219_s13 = sshll.u32 %s213_s12, 4  ;;  %p1725_p5 = pnand %p2155_p4, %p80_p3  ;;  %s1721_s13 = int_to_ptr.vmem [resolvable:$true] %s219_s13 }
  0x1d   : > { %s2193_s2 = sld [smem:[#allocation33_spill]]  ;;  %s1737_s30 = scalar_lea.sflag [#allocation7], %s209_s5 }
  0x1e   : > { %s2191_s14 = scalar_select %p1725_p5, 1, 0 }
  0x1f   : > { %2194 = sst [smem:[#allocation24_spill]] %s1737_s30  ;;  %p2168_p7 = pneg %p1725_p5 }
  0x20   : > { %s1718_s11 = scalar_lea.hbm %s2190_s1, %s961_s8  ;;  %2192 = sst [smem:[#allocation23_spill]] %s2191_s14 }
  0x21   : > { %s1311_s12 = scalar_lea.hbm %s1718_s11, 1024  ;;  %s1316_s29 = scalar_lea.hbm %s2190_s1, 8192 }
  0x22   : > { %p1312_p6 = scmp.ne.s32.totalorder %s1718_s11, %s1311_s12  ;;  %p1317_p10 = scmp.lt.u32.totalorder %s1718_s11, %s2190_s1 }
  0x23   : > { %s1732_s9 = scalar_lea.hbm %s2193_s2, %s961_s8  ;;  %p1318_p11 = scmp.lt.u32.totalorder %s1316_s29, %s1311_s12 }
  0x24   : > { %s1735_s10 = scalar_lea.hbm %s1732_s9, 256  ;;  %p1314_p8 = pnand %p2168_p7, %p1312_p6 }
  0x25   : > { %p1319_p12 = por %p1318_p11, %p1317_p10  ;;  %p1320_p13 = scmp.lt.u32.totalorder %s1311_s12, %s1718_s11 }
  0x26   : > { %p1315_p9 = pneg %p1314_p8 }
  0x27   : > { %p1321_p1 = por %p1320_p13, %p1319_p12 }
  0x29   : > { %p1322_p3 = pnand %p1321_p1, %p1315_p9 }
  0x2b   : > { %1325 = shalt.err (!%p1322_p3)
}
  0x2c   : > { %s1326_s5 = scalar_lea.vmem %s1721_s13, 1024  ;;  %s1592_s4 = smov [#allocation6]  }
  0x2d   : > { %p1327_p6 = scmp.ne.s32.totalorder %s1721_s13, %s1326_s5  ;;  %s1331_s25 = sshll.u32 %s1592_s4, 4  ;;  %s1332_s25 = int_to_ptr.vmem [resolvable:$false] %s1331_s25 }
  0x2e   : > { %s1333_s6 = scalar_lea.vmem %s1332_s25, 2048  ;;  %p1334_p2 = scmp.lt.s32.totalorder %s1721_s13, %s1332_s25 }
  0x2f   : > { %p1329_p8 = pnand %p1327_p6, %p2168_p7  ;;  %p1335_p10 = scmp.lt.s32.totalorder %s1333_s6, %s1326_s5 }
  0x31   : > { %p1330_p4 = pneg %p1329_p8  ;;  %p1336_p11 = por %p1335_p10, %p1334_p2 }
  0x33   : > { %p1337_p12 = pnand %p1336_p11, %p1330_p4 }
  0x35   : > { %1340 = shalt.err (!%p1337_p12)
}
  0x36   : > { %s2156_s12 = smov 512   ;;  %s2157_s29 = smov 64  }
  0x37   : > { %s2159_s8 = smov 4   ;;  %p967_p2 = scmp.ge.s32.totalorder %s1590_s28, 1 }
  0x38   : > { %1138 = dma.hbm_to_vmem [thread:$0]  (!%p1725_p5), %s1718_s11, 1024, %s1721_s13, %s1737_s30, %s2156_s12, %s2157_s29, %s2159_s8  }
  0x39   : > { %p269_p4 = scmp.lt.s32.totalorder %s1590_s28, 9  ;;  %s1775_s4 = sadd.s32 4294967295, %s1590_s28  }
  0x3a   : > { %s954_s25 = sadd.s32 4294967294, %s1590_s28   ;;  %s35_s6 = sadd.s32 1, %s1582_s26 }
  0x3b   : > { %p1770_p9 = pnand %p967_p2, %p269_p4  ;;  %p36_p13 = scmp.ge.s32.totalorder %s35_s6, 4 }
  0x3c   : > { %s38_s11 = sadd.s32 1, %s1586_s27  ;;  %s45_s13 = sadd.s32 1, %s1570_s23 }
  0x3d   : > { %s2195_s5 = scalar_select %p1770_p9, 1, 0 }
  0x3e   : > { %p52_p1 = scmp.ne.s32.totalorder %s1570_s23, %s1566_s22  ;;  %s2260_s6 = smov (%p36_p13, %s35_s6), 0 }
  0x3f   : > { %2196 = sst [smem:[#allocation25_spill]] %s2195_s5  ;;  %s2262_s11 = smov (!%p36_p13, %s38_s11), %s1586_s27 }
  0x40   : > { %2197 = sst [smem:[#allocation26_spill]] %s2260_s6  ;;  %p1791_p3 = por %p2169_p0, %p52_p1 }
  0x41   : > { %p58_p6 = scmp.ne.s32.totalorder %s1566_s22, %s1562_s21  ;;  %p40_p8 = scmp.ge.s32.totalorder %s2262_s11, 2 }
  0x42   : > { %p2170_p10 = scmp.eq.s32.totalorder %s1775_s4, 0  ;;  %s68_s29 = ssub.s32 %s1582_s26, %s2260_s6 }
  0x43   : > { %s95_s8 = sadd.s32 4, %s2260_s6  ;;  %s2264_s11 = smov (%p40_p8, %s2262_s11), 0 }
  0x44   : > { %2199 = sst [smem:[#allocation27_spill]] %s2264_s11  ;;  %p1808_p11 = por %p2170_p10, %p58_p6 }
  0x45   : > { %p69_p12 = scmp.eq.s32.totalorder %s68_s29, 0  ;;  %s42_s24 = ssub.s32 %s1586_s27, %s2264_s11 }
  0x46   : > { %s2200_s1 = scalar_select %p1808_p11, 1, 0 }
  0x47   : > { %p2201_p2 = scmp.ne.s32.totalorder %s1554_s19, %s1550_s18  ;;  %p43_p13 = scmp.eq.s32.totalorder %s42_s24, 0 }
  0x48   : > { %s2203_s6 = sadd.s32 4, %s1582_s26  ;;  %s2204_s14 = sadd.s32 1, %s1558_s20 }
  0x49   : > { %p1819_p4 = por %p2201_p2, %p2170_p10  ;;  %s1825_s3 = ssub.s32 %s2203_s6, %s95_s8 }
  0x4a   : > { %s1830_s7 = scalar_select %p69_p12, %s1558_s20, %s2204_s14  }
  0x4b   : > { %s2202_s5 = scalar_select %p1819_p4, 1, 0 }
  0x4c   : > { %2205 = sst [smem:[#allocation28_spill]] %s1830_s7  ;;  %p162_p7 = scmp.eq.s32.totalorder %s1775_s4, 7 }
  0x4d   : > { %s1833_s30 = scalar_select %p43_p13, %s1570_s23, %s45_s13  }
  0x4e   : > { %p168_p0 = scmp.eq.s32.totalorder %s954_s25, 7  ;;  %s188_s18 = sand.u32 1, %s1570_s23  }
  0x4f   : > { %2206 = sst [smem:[#allocation29_spill]] %s1833_s30  ;;  %p1841_p2 = por %p162_p7, %p52_p1 }
  0x50   : > { %p1848_p10 = por %p168_p0, %p58_p6  ;;  %s957_s8 = sshll.u32 %s188_s18, 4 }
  0x51   : > { %s2207_s29 = scalar_select %p1841_p2, 1, 0 }
  0x52   : > { %s2208_s24 = scalar_select %p1848_p10, 1, 0 }
  0x53   : > { %s1014_s6 = sshll.u32 %s1586_s27, 8  ;;  %s2209_s0 = sld [smem:[#allocation31_spill]] }
  0x54   : > { %s192_s25 = scalar_lea.vmem [#allocation3], %s957_s8  ;;  %p2210_p0 = scmp.lt.s32.totalorder %s1590_s28, 8 }
  0x55   : > { %s199_s30 = sshll.u32 %s192_s25, 4  ;;  %s1868_s27 = scalar_lea.sflag [#allocation4], %s188_s18  ;;  %s1858_s30 = int_to_ptr.vmem [resolvable:$true] %s199_s30 }
  0x56   : > { %p1864_p7 = pnand %p2210_p0, %p1791_p3 }
  0x58   : > { %p1343_p6 = pneg %p1864_p7 }
  0x59   : > { %s1856_s13 = scalar_lea.hbm %s2209_s0, %s1014_s6  ;;  %s1346_s12 = scalar_lea.hbm %s2209_s0, 512 }
  0x5a   : > { %s1341_s11 = scalar_lea.hbm %s1856_s13, 256  ;;  %p1347_p3 = scmp.lt.u32.totalorder %s1856_s13, %s2209_s0 }
  0x5b   : > { %p1342_p1 = scmp.ne.s32.totalorder %s1856_s13, %s1341_s11  ;;  %p1348_p0 = scmp.lt.u32.totalorder %s1346_s12, %s1341_s11 }
  0x5c   : > { %p1350_p10 = scmp.lt.u32.totalorder %s1341_s11, %s1856_s13 }
  0x5d   : > { %p1344_p12 = pnand %p1343_p6, %p1342_p1  ;;  %p1349_p8 = por %p1348_p0, %p1347_p3 }
  0x5f   : > { %p1345_p13 = pneg %p1344_p12  ;;  %p1351_p2 = por %p1350_p10, %p1349_p8 }
  0x61   : > { %p1352_p4 = pnand %p1351_p2, %p1345_p13 }
  0x63   : > { %1355 = shalt.err (!%p1352_p4)
}
  0x64   : > { %s1356_s18 = scalar_lea.vmem %s1858_s30, 256  ;;  %s1596_s8 = smov [#allocation3]  }
  0x65   : > { %p1357_p1 = scmp.ne.s32.totalorder %s1858_s30, %s1356_s18  ;;  %s1361_s6 = sshll.u32 %s1596_s8, 4  ;;  %s1362_s6 = int_to_ptr.vmem [resolvable:$false] %s1361_s6 }
  0x66   : > { %s1363_s14 = scalar_lea.vmem %s1362_s6, 512  ;;  %p1364_p9 = scmp.lt.s32.totalorder %s1858_s30, %s1362_s6 }
  0x67   : > { %p1359_p12 = pnand %p1357_p1, %p1343_p6  ;;  %p1365_p3 = scmp.lt.s32.totalorder %s1363_s14, %s1356_s18 }
  0x69   : > { %p1360_p11 = pneg %p1359_p12  ;;  %p1366_p0 = por %p1365_p3, %p1364_p9 }
  0x6b   : > { %p1367_p10 = pnand %p1366_p0, %p1360_p11 }
  0x6d   : > { %1370 = shalt.err (!%p1367_p10)
}
  0x6e   : > { %s2212_s11 = smov 4   ;;  %s2213_s12 = smov 64  }
  0x6f   : > { %1135 = dma.hbm_to_vmem [thread:$0]  (!%p1864_p7), %s1856_s13, 256, %s1858_s30, %s1868_s27, %s2213_s12, %s2213_s12, %s2212_s11  }
  0x70   : > { %s99_s23 = sadd.s32 1, %s1546_s17  ;;  %p2214_p9 = scmp.eq.s32.totalorder %s1825_s3, 0 }
  0x71   : > { %p106_p11 = scmp.ne.s32.totalorder %s1546_s17, %s1542_s16  ;;  %p112_p4 = scmp.ne.s32.totalorder %s1542_s16, %s1538_s15 }
  0x72   : > { %s1903_s25 = scalar_select %p2214_p9, %s1546_s17, %s99_s23  }
  0x73   : > { %s231_s18 = sand.u32 1, %s1546_s17   ;;  %p2216_p8 = scmp.eq.s32.totalorder %s1590_s28, 0 }
  0x74   : > { %2215 = sst [smem:[#allocation30_spill]] %s1903_s25  ;;  %p2217_p6 = scmp.eq.s32.totalorder %s1775_s4, 0 }
  0x75   : > { %p108_p2 = por %p106_p11, %p2216_p8  ;;  %s962_s6 = sshll.u32 %s231_s18, 6 }
  0x76   : > { %p1914_p13 = por %p112_p4, %p2217_p6  ;;  %p2219_p1 = scmp.lt.s32.totalorder %s1590_s28, 8 }
  0x77   : > { %s233_s3 = scalar_lea.vmem [#allocation8], %s962_s6  ;;  %s1015_s30 = sshll.u32 %s1582_s26, 10 }
  0x78   : > { %s2218_s8 = scalar_select %p1914_p13, 1, 0 }
  0x79   : > { %p1920_p12 = pnand %p2219_p1, %p108_p2  ;;  %s240_s15 = sshll.u32 %s233_s3, 4  ;;  %s1925_s15 = int_to_ptr.vmem [resolvable:$true] %s240_s15 }
  0x7a   : > { %s1401_s13 = scalar_lea.hbm %s1732_s9, 1280  ;;  %s1376_s18 = scalar_lea.hbm %s2193_s2, 8192 }
  0x7b   : > { %p1372_p7 = scmp.ne.s32.totalorder %s1735_s10, %s1401_s13  ;;  %p1373_p3 = pneg %p1920_p12 }
  0x7c   : > { %p1377_p9 = scmp.lt.u32.totalorder %s1735_s10, %s2193_s2  ;;  %p1378_p11 = scmp.lt.u32.totalorder %s1376_s18, %s1401_s13 }
  0x7d   : > { %p1374_p0 = pnand %p1373_p3, %p1372_p7  ;;  %p1380_p8 = scmp.lt.u32.totalorder %s1401_s13, %s1735_s10 }
  0x7e   : > { %p1379_p4 = por %p1378_p11, %p1377_p9 }
  0x7f   : > { %p1375_p10 = pneg %p1374_p0 }
  0x80   : > { %p1381_p2 = por %p1380_p8, %p1379_p4 }
  0x82   : > { %p1382_p6 = pnand %p1381_p2, %p1375_p10 }
  0x84   : > { %1385 = shalt.err (!%p1382_p6)
}
  0x85   : > { %s1386_s9 = scalar_lea.vmem %s1925_s15, 1024  ;;  %s1597_s6 = smov [#allocation8]  }
  0x86   : > { %p1387_p1 = scmp.ne.s32.totalorder %s1925_s15, %s1386_s9  ;;  %s1391_s3 = sshll.u32 %s1597_s6, 4  ;;  %s1392_s3 = int_to_ptr.vmem [resolvable:$false] %s1391_s3 }
  0x87   : > { %s1393_s0 = scalar_lea.vmem %s1392_s3, 2048  ;;  %p1394_p13 = scmp.lt.s32.totalorder %s1925_s15, %s1392_s3 }
  0x88   : > { %p1389_p7 = pnand %p1387_p1, %p1373_p3  ;;  %p1395_p9 = scmp.lt.s32.totalorder %s1393_s0, %s1386_s9 }
  0x8a   : > { %p1390_p0 = pneg %p1389_p7  ;;  %p1396_p11 = por %p1395_p9, %p1394_p13 }
  0x8c   : > { %p1397_p4 = pnand %p1396_p11, %p1390_p0 }
  0x8e   : > { %1400 = shalt.err (!%p1397_p4)
}
  0x8f   : > { %s2221_s7 = smov 512   ;;  %s2222_s13 = sld [smem:[#allocation24_spill]] }
  0x90   : > { %s2223_s14 = sld [smem:[#allocation22_spill]]  ;;  %s2225_s9 = sld [smem:[#allocation34_spill]] }
  0x91   : > { %s2226_s2 = sand.u32 1, %s1558_s20  }
  0x92   : > { %s1968_s25 = scalar_lea.sflag [#allocation10], %s2226_s2 }
  0x95   : > { %1141 = dma.hbm_to_vmem [thread:$0]  (!%p1920_p12), %s1735_s10, 1024, %s1925_s15, %s2222_s13, %s2221_s7, %s2213_s12, %s2212_s11  }
  0x96   : > { %s1961_s3 = scalar_lea.hbm %s2225_s9, %s1015_s30  ;;  %s254_s27 = scalar_lea.vmem [#allocation9], %s2223_s14 }
  0x97   : > { %s261_s0 = sshll.u32 %s254_s27, 4  ;;  %s1402_s17 = scalar_lea.hbm %s1961_s3, 1024  ;;  %s1964_s0 = int_to_ptr.vmem [resolvable:$true] %s261_s0 }
  0x98   : > { %p1403_p13 = scmp.ne.s32.totalorder %s1961_s3, %s1402_s17  ;;  %p2227_p12 = pneg %p1725_p5 }
  0x99   : > { %s1407_s30 = scalar_lea.hbm %s2225_s9, 4096  ;;  %p1408_p8 = scmp.lt.u32.totalorder %s1961_s3, %s2225_s9 }
  0x9a   : > { %p1405_p3 = pnand %p1403_p13, %p2227_p12  ;;  %p1409_p2 = scmp.lt.u32.totalorder %s1407_s30, %s1402_s17 }
  0x9b   : > { %p1411_p1 = scmp.lt.u32.totalorder %s1402_s17, %s1961_s3 }
  0x9c   : > { %p1406_p10 = pneg %p1405_p3  ;;  %p1410_p6 = por %p1409_p2, %p1408_p8 }
  0x9e   : > { %p1412_p7 = por %p1411_p1, %p1410_p6 }
  0xa0   : > { %p1413_p0 = pnand %p1412_p7, %p1406_p10 }
  0xa2   : > { %1416 = shalt.err (!%p1413_p0)
}
  0xa3   : > { %s1417_s2 = scalar_lea.vmem %s1964_s0, 1024  ;;  %p2228_p11 = pmov %p2227_p12 }
  0xa4   : > { %p1418_p9 = scmp.ne.s32.totalorder %s1964_s0, %s1417_s2  ;;  %s1598_s14 = smov [#allocation9]  }
  0xa5   : > { %s1422_s18 = sshll.u32 %s1598_s14, 4  ;;  %s1423_s18 = int_to_ptr.vmem [resolvable:$false] %s1422_s18 }
  0xa6   : > { %p1420_p4 = pnand %p1418_p9, %p2228_p11  ;;  %s1424_s6 = scalar_lea.vmem %s1423_s18, 2048 }
  0xa7   : > { %p1425_p12 = scmp.lt.s32.totalorder %s1964_s0, %s1423_s18  ;;  %p1426_p3 = scmp.lt.s32.totalorder %s1424_s6, %s1417_s2 }
  0xa8   : > { %p1421_p13 = pneg %p1420_p4 }
  0xa9   : > { %p1427_p8 = por %p1426_p3, %p1425_p12 }
  0xab   : > { %p1428_p2 = pnand %p1427_p8, %p1421_p13 }
  0xad   : > { %1431 = shalt.err (!%p1428_p2)
}
  0xae   : > { %1144 = dma.hbm_to_vmem [thread:$0]  (!%p1725_p5), %s1961_s3, 1024, %s1964_s0, %s1968_s25, %s2213_s12, %s2213_s12, %s2212_s11  }
  0xaf   : > { %s2229_s17 = sld [smem:[#allocation25_spill]] }
  0xb5   : > { %p2230_p10 = scmp.ne.s32.totalorder %s2229_s17, 0 }
  0xb6   : > { %s2000_s27 = sand.u32 (!%p2230_p10), 1, %s1566_s22   ;;  %p2231_p6 = scmp.ne.s32.totalorder (!%p2230_p10), %s2200_s1, 0 }
  0xb7   : > { %273 = sbr.rel (%p2230_p10) target bundleno = 754 (0x2f2), region = 36  ;;  %s968_s10 = sshll.u32 (!%p2230_p10), %s2000_s27, 4 }
  0xb8   : > { %s276_s15 = scalar_lea.sflag (!%p2230_p10), [#allocation4], %s2000_s27  ;;  %s2004_s30 = scalar_lea.vmem (!%p2230_p10), [#allocation3], %s968_s10 }
  0xbe   : > { %1517 = dma.done.wait (%p2231_p6), %s276_s15, 256  }
  0xbf   : > { %1519 = vsyncadd (%p2231_p6), %s276_s15, 4294967040  ;;  %s284_s11 = sand.u32 1, %s1775_s4   ;;  %s286_s12 = sand.u32 1, %s1554_s19  }
  0xc0   : > { %s969_s25 = sshll.u32 %s286_s12, 6  ;;  %s285_s23 = scalar_lea.sflag [#allocation7], %s284_s11 }
  0xc1   : > { %s2012_s3 = scalar_lea.vmem [#allocation6], %s969_s25  ;;  %p2232_p5 = scmp.ne.s32.totalorder %s2202_s5, 0 }
  0xc3   : > { %1521 = dma.done.wait (%p2232_p5), %s285_s23, 1024  }
  0xc4   : > { %1523 = vsyncadd (%p2232_p5), %s285_s23, 4294966272  ;;  %s295_s0 = sand.u32 1, %s1542_s16   ;;  %p2233_p1 = scmp.ne.s32.totalorder %s2218_s8, 0 }
  0xc5   : > { %s970_s7 = sshll.u32 %s295_s0, 6 }
  0xc6   : > { %s2019_s1 = scalar_lea.vmem [#allocation8], %s970_s7 }
  0xc7   : > { %1525 = dma.done.wait (%p2233_p1), %s285_s23, 1024  }
  0xc8   : > { %1527 = vsyncadd (%p2233_p1), %s285_s23, 4294966272  ;;  %s303_s4 = scalar_lea.sflag [#allocation10], %s286_s12  ;;  %s2025_s13 = scalar_lea.vmem [#allocation9], %s969_s25 }
  0xc9   : > { %1529 = dma.done.wait (%p2232_p5), %s303_s4, 1024  }
  0xca   : > { %1531 = vsyncadd (%p2232_p5), %s303_s4, 4294966272  ;;  %s2031_s2 = scalar_lea.vmem [#allocation11], %s968_s10  ;;  %s2234_s14 = sld [smem:[#allocation19_spill]] }
  0xd0   : > { %p973_p7 = scmp.ne.s32.totalorder %s2234_s14, 0 }
  0xd1   : > { %v1599_v0 = vmov (!%p973_p7), 0.0  }
  0xd2   : > { %354 = sbr.rel (%p973_p7) target bundleno = 217 (0xd9), region = 56  ;;  %355 = vst [vmem:[#allocation2] sm:$0xff] (!%p973_p7), %v1599_v0  ;;  %356 = vst [vmem:[#allocation2 + $0x8] sm:$0xff] (!%p973_p7), %v1599_v0 }
  0xd3   : > { %357 = vst [vmem:[#allocation2 + $0x10] sm:$0xff] (!%p973_p7), %v1599_v0  ;;  %358 = vst [vmem:[#allocation2 + $0x18] sm:$0xff] (!%p973_p7), %v1599_v0 }
  0xd9 PF: > { %v1269_v1 = vld [vmem:[%s2012_s3] sm:$0xff]   ;;  %v1270_v2 = vld [vmem:[%s2012_s3 + $0x8] sm:$0xff]   ;;  %v1271_v3 = vld [vmem:[%s2012_s3 + $0x10] sm:$0xff]   ;;  %s2235_s5 = sld [smem:[#allocation19_spill]] }
  0xda   : > { %1062 = vmatprep.subr.bf16.mxu0 %v1269_v1  ;;  %v1276_v4 = vld [vmem:[%s2019_s1] sm:$0xff]   ;;  %v1272_v5 = vld [vmem:[%s2012_s3 + $0x18] sm:$0xff]   ;;  %v1278_v6 = vld [vmem:[%s2019_s1 + $0x8] sm:$0xff]  }
  0xdb   : > { %1063 = vmatpush3.bf16.msra.mxu0 %v1269_v1  ;;  %1082 = vmatprep.subr.bf16.mxu1 %v1276_v4  ;;  %v1279_v7 = vld [vmem:[%s2004_s30] sm:$0xff]   ;;  %v1282_v10 = vld [vmem:[%s2019_s1 + $0x18] sm:$0xff]   ;;  %v1274_v11 = vld [vmem:[%s2012_s3 + $0x28] sm:$0xff]  }
  0xdc   : > { %1064 = vmatprep.subr.bf16.mxu0 %v1270_v2  ;;  %1083 = vmatpush3.bf16.msra.mxu1 %v1276_v4  ;;  %v1273_v8 = vld [vmem:[%s2012_s3 + $0x20] sm:$0xff]   ;;  %v1281_v9 = vld [vmem:[%s2019_s1 + $0x10] sm:$0xff]   ;;  %v1284_v14 = vld [vmem:[%s2019_s1 + $0x28] sm:$0xff]  }
  0xdd   : > { %1084 = vmatprep.subr.bf16.mxu1 %v1278_v6  ;;  %1078 = vmatprep.mubr.bf16.mxu0 %v1279_v7  ;;  %v1283_v12 = vld [vmem:[%s2019_s1 + $0x20] sm:$0xff]   ;;  %v1275_v13 = vld [vmem:[%s2012_s3 + $0x30] sm:$0xff]   ;;  %v1277_v15 = vld [vmem:[%s2012_s3 + $0x38] sm:$0xff]  }
  0xde   : > { %1098 = vmatprep.mubr.bf16.mxu1 %v1279_v7  ;;  %v1285_v16 = vld [vmem:[%s2019_s1 + $0x30] sm:$0xff]   ;;  %v1280_v17 = vld [vmem:[%s2004_s30 + $0x8] sm:$0xff]   ;;  %v1287_v19 = vld [vmem:[%s2025_s13] sm:$0xff]  }
  0xdf   : > { %1065 = vmatpush3.bf16.msra.mxu0 %v1270_v2  ;;  %v1286_v18 = vld [vmem:[%s2019_s1 + $0x38] sm:$0xff]   ;;  %v1288_v20 = vld [vmem:[%s2025_s13 + $0x8] sm:$0xff]   ;;  %v1289_v21 = vld [vmem:[%s2025_s13 + $0x10] sm:$0xff]   ;;  %p1004_p0 = scmp.ne.s32.totalorder %s2235_s5, 3 }
  0xe0   : > { %1066 = vmatprep.subr.bf16.mxu0 %v1271_v3  ;;  %1085 = vmatpush3.bf16.msra.mxu1 %v1278_v6  ;;  %v1290_v22 = vld [vmem:[%s2025_s13 + $0x18] sm:$0xff]   ;;  %v1291_v23 = vld [vmem:[%s2025_s13 + $0x20] sm:$0xff]   ;;  %v1292_v24 = vld [vmem:[%s2025_s13 + $0x28] sm:$0xff]  }
  0xe1   : > { %1086 = vmatprep.subr.bf16.mxu1 %v1281_v9  ;;  %v1293_v25 = vld [vmem:[%s2025_s13 + $0x30] sm:$0xff]   ;;  %v1294_v26 = vld [vmem:[%s2025_s13 + $0x38] sm:$0xff]   ;;  %v635_v62 = vld [vmem:[#allocation2] sm:$0xff] }
  0xe2   : > { %v637_v61 = vld [vmem:[#allocation2 + $0x10] sm:$0xff]  ;;  %v638_v0 = vld [vmem:[#allocation2 + $0x18] sm:$0xff] }
  0xe3   : > { %1067 = vmatpush3.bf16.msra.mxu0 %v1271_v3  ;;  %v636_v3 = vld [vmem:[#allocation2 + $0x8] sm:$0xff] }
  0xe4   : > { %1068 = vmatprep.subr.bf16.mxu0 %v1272_v5  ;;  %1087 = vmatpush3.bf16.msra.mxu1 %v1281_v9 }
  0xe5   : > { %1088 = vmatprep.subr.bf16.mxu1 %v1282_v10 }
  0xe7   : > { %1069 = vmatpush3.bf16.msra.mxu0 %v1272_v5 }
  0xe8   : > { %1070 = vmatprep.subr.bf16.mxu0 %v1273_v8  ;;  %1089 = vmatpush3.bf16.msra.mxu1 %v1282_v10 }
  0xe9   : > { %1090 = vmatprep.subr.bf16.mxu1 %v1283_v12 }
  0xeb   : > { %1071 = vmatpush3.bf16.msra.mxu0 %v1273_v8 }
  0xec   : > { %1072 = vmatprep.subr.bf16.mxu0 %v1274_v11  ;;  %1091 = vmatpush3.bf16.msra.mxu1 %v1283_v12 }
  0xed   : > { %1092 = vmatprep.subr.bf16.mxu1 %v1284_v14 }
  0xef   : > { %1073 = vmatpush3.bf16.msra.mxu0 %v1274_v11 }
  0xf0   : > { %1074 = vmatprep.subr.bf16.mxu0 %v1275_v13  ;;  %1093 = vmatpush3.bf16.msra.mxu1 %v1284_v14 }
  0xf1   : > { %1094 = vmatprep.subr.bf16.mxu1 %v1285_v16 }
  0xf3   : > { %1075 = vmatpush3.bf16.msra.mxu0 %v1275_v13 }
  0xf4   : > { %1076 = vmatprep.subr.bf16.mxu0 %v1277_v15  ;;  %1095 = vmatpush3.bf16.msra.mxu1 %v1285_v16 }
  0xf5   : > { %1096 = vmatprep.subr.bf16.mxu1 %v1286_v18 }
  0xf7   : > { %1077 = vmatpush3.bf16.msra.mxu0 %v1277_v15 }
  0xf8   : > { %1097 = vmatpush3.bf16.msra.mxu1 %v1286_v18  ;;  %1102 = vmatprep.subr.bf16.mxu0 %v1287_v19 }
  0xfa   : > { %1079 = vmatmul.mubr.bf16.vlgmr.msra.gmra.mrb[0].mxu0 %v1280_v17 }
  0xfb   : > { %1099 = vmatmul.mubr.bf16.vlgmr.msra.gmra.mrb[0].mxu1 %v1280_v17  ;;  %1103 = vmatpush3.bf16.msra.mxu0 %v1287_v19 }
  0xfc   : > { %1104 = vmatprep.subr.bf16.mxu0 %v1288_v20 }
  0xff   : > { %1105 = vmatpush3.bf16.msra.mxu0 %v1288_v20 }
 0x100   : > { %1106 = vmatprep.subr.bf16.mxu0 %v1289_v21 }
 0x103   : > { %1107 = vmatpush3.bf16.msra.mxu0 %v1289_v21 }
 0x104   : > { %1108 = vmatprep.subr.bf16.mxu0 %v1290_v22 }
 0x107   : > { %1109 = vmatpush3.bf16.msra.mxu0 %v1290_v22 }
 0x108   : > { %1110 = vmatprep.subr.bf16.mxu0 %v1291_v23 }
 0x10b   : > { %1111 = vmatpush3.bf16.msra.mxu0 %v1291_v23 }
 0x10c   : > { %1112 = vmatprep.subr.bf16.mxu0 %v1292_v24 }
 0x10f   : > { %1113 = vmatpush3.bf16.msra.mxu0 %v1292_v24 }
 0x110   : > { %1114 = vmatprep.subr.bf16.mxu0 %v1293_v25 }
 0x113   : > { %1115 = vmatpush3.bf16.msra.mxu0 %v1293_v25 }
 0x114   : > { %1116 = vmatprep.subr.bf16.mxu0 %v1294_v26 }
 0x117   : > { %1117 = vmatpush3.bf16.msra.mxu0 %v1294_v26 }
 0x1cd   : > { %v1080_v27 = vpop.f32.mrb[0].mxu0 }
 0x1ce   : > { %v994_v28 = vmul.f32 -1.442695, %v1080_v27  ;;  %v473_v29 = vpop.f32.mrb[1].mxu0  ;;  %v1100_v35 = vpop.f32.mrb[0].mxu1 }
 0x1cf   : > { %v992_v30 = vmul.f32 -1.442695, %v473_v29  ;;  %v1081_v31 = vpop.f32.mrb[2].mxu0  ;;  %v586_v36 = vpop.f32.mrb[1].mxu1 }
 0x1d0   : > { %1295 = vpow2.f32 %v994_v28  ;;  %v995_v32 = vmul.f32 -1.442695, %v1081_v31  ;;  %v476_v33 = vpop.f32.mrb[3].mxu0  ;;  %v1101_v37 = vpop.f32.mrb[2].mxu1 }
 0x1d1   : > { %1297 = vpow2.f32 %v992_v30  ;;  %v993_v34 = vmul.f32 -1.442695, %v476_v33  ;;  %v589_v38 = vpop.f32.mrb[3].mxu1 }
 0x1d2   : > { %1299 = vpow2.f32 %v995_v32 }
 0x1d3   : > { %1301 = vpow2.f32 %v993_v34 }
 0x1da   : > { %v1296_v39 = vpop.eup %1295 }
 0x1db   : > { %v1298_v40 = vpop.eup %1297  ;;  %v615_v41 = vadd.f32 1.0, %v1296_v39 }
 0x1dc   : > { %v1300_v42 = vpop.eup %1299  ;;  %v613_v43 = vadd.f32 1.0, %v1298_v40 }
 0x1dd   : > { %v1302_v44 = vpop.eup %1301  ;;  %1303 = vrcp.f32 %v615_v41  ;;  %v616_v45 = vadd.f32 1.0, %v1300_v42 }
 0x1de   : > { %1305 = vrcp.f32 %v613_v43  ;;  %v614_v46 = vadd.f32 1.0, %v1302_v44 }
 0x1df   : > { %1307 = vrcp.f32 %v616_v45 }
 0x1e0   : > { %1309 = vrcp.f32 %v614_v46 }
 0x1e7   : > { %v1304_v47 = vpop.eup %1303 }
 0x1e8   : > { %v1306_v48 = vpop.eup %1305  ;;  %v627_v49 = vmul.f32 %v1304_v47, %v1080_v27 }
 0x1e9   : > { %v1308_v50 = vpop.eup %1307  ;;  %v625_v51 = vmul.f32 %v1306_v48, %v473_v29 }
 0x1ea   : > { %v1310_v52 = vpop.eup %1309  ;;  %v628_v53 = vmul.f32 %v1308_v50, %v1081_v31  ;;  %v631_v54 = vmul.f32 %v1100_v35, %v627_v49 }
 0x1eb   : > { %v626_v55 = vmul.f32 %v1310_v52, %v476_v33  ;;  %v629_v56 = vmul.f32 %v625_v51, %v586_v36 }
 0x1ec   : > { %v632_v57 = vmul.f32 %v1101_v37, %v628_v53 }
 0x1ed   : > { %v630_v58 = vmul.f32 %v626_v55, %v589_v38 }
 0x1ee   : > { %v634_v59 = vpack.c.bf16 %v632_v57, %v631_v54 }
 0x1ef   : > { %v633_v60 = vpack.c.bf16 %v630_v58, %v629_v56 }
 0x1f1   : > { %1118 = vmatprep.mubr.bf16.mxu0 %v633_v60 }
 0x1f2   : > { %1119 = vmatmul.mubr.bf16.vlgmr.msra.gmra.mrb[4].mxu0 %v634_v59 }
 0x2c5   : > { %v1120_v63 = vpop.f32.mrb[4].mxu0  ;;  %763 = sbr.rel (%p1004_p0) target bundleno = 726 (0x2d6), region = 60 }
 0x2c6   : > { %v754_v1 = vadd.f32 %v1120_v63, %v637_v61  ;;  %v737_v2 = vpop.f32.mrb[5].mxu0 }
 0x2c7   : > { %v752_v4 = vadd.f32 %v737_v2, %v635_v62  ;;  %v1121_v5 = vpop.f32.mrb[6].mxu0 }
 0x2c8   : > { %758 = vst [vmem:[#allocation2 + $0x10] sm:$0xff] %v754_v1  ;;  %v755_v6 = vadd.f32 %v1121_v5, %v638_v0  ;;  %v740_v7 = vpop.f32.mrb[7].mxu0 }
 0x2c9   : > { %756 = vst [vmem:[#allocation2] sm:$0xff] %v752_v4  ;;  %v753_v8 = vadd.f32 %v740_v7, %v636_v3 }
 0x2ca   : > { %759 = vst [vmem:[#allocation2 + $0x18] sm:$0xff] %v755_v6 }
 0x2cb   : > { %757 = vst [vmem:[#allocation2 + $0x8] sm:$0xff] %v753_v8 }
 0x2cf   : > { %v766_v11 = vld [vmem:[#allocation2 + $0x10] sm:$0xff] }
 0x2d0   : > { %v764_v9 = vld [vmem:[#allocation2] sm:$0xff] }
 0x2d1   : > { %v767_v13 = vld [vmem:[#allocation2 + $0x18] sm:$0xff] }
 0x2d2   : > { %v765_v10 = vld [vmem:[#allocation2 + $0x8] sm:$0xff]  ;;  %v1029_v14 = vpack.c.bf16 %v767_v13, %v766_v11 }
 0x2d3   : > { %v1024_v12 = vpack.c.bf16 %v765_v10, %v764_v9 }
 0x2d4   : > { %1031 = vst [vmem:[%s2031_s2 + $0x8] sm:$0xff] %v1029_v14  }
 0x2d5   : > { %1025 = vst [vmem:[%s2031_s2] sm:$0xff] %v1024_v12  }
 0x2d6 PF: > { %s2236_s8 = sld [smem:[#allocation20_spill]]  ;;  %s2237_s10 = sld [smem:[#allocation35_spill]] }
 0x2d7   : > { %s802_s30 = sshll.u32 %s2031_s2, 4  ;;  %s789_s11 = scalar_lea.sflag [#allocation5], %s2000_s27  ;;  %s2070_s30 = int_to_ptr.vmem [resolvable:$true] %s802_s30 }
 0x2d8   : > { %s1432_s12 = scalar_lea.vmem %s2070_s30, 256  ;;  %p2238_p11 = scmp.ne.s32.totalorder %s2207_s29, 0 }
 0x2d9   : > { %p1433_p9 = scmp.ne.s32.totalorder %s2070_s30, %s1432_s12  ;;  %s1600_s25 = smov [#allocation11]  }
 0x2da   : > { %s1436_s23 = sshll.u32 %s1600_s25, 4  ;;  %s1437_s23 = int_to_ptr.vmem [resolvable:$false] %s1436_s23 }
 0x2db   : > { %p1434_p4 = pnand %p1433_p9, %p2238_p11  ;;  %s1438_s3 = scalar_lea.vmem %s1437_s23, 512 }
 0x2dc   : > { %s1020_s18 = sshll.u32 %s2236_s8, 8  ;;  %p1439_p12 = scmp.lt.s32.totalorder %s2070_s30, %s1437_s23 }
 0x2dd   : > { %s2067_s15 = scalar_lea.hbm %s2237_s10, %s1020_s18  ;;  %p1435_p13 = pneg %p1434_p4 }
 0x2de   : > { %p1440_p3 = scmp.lt.s32.totalorder %s1438_s3, %s1432_s12 }
 0x2e0   : > { %p1441_p8 = por %p1440_p3, %p1439_p12 }
 0x2e2   : > { %p1442_p2 = pnand %p1441_p8, %p1435_p13 }
 0x2e4   : > { %1445 = shalt.err (!%p1442_p2)
}
 0x2e5   : > { %s1446_s0 = scalar_lea.hbm %s2067_s15, 256  ;;  %s1450_s4 = scalar_lea.hbm %s2237_s10, 512 }
 0x2e6   : > { %p1447_p10 = scmp.ne.s32.totalorder %s2067_s15, %s1446_s0  ;;  %p1451_p1 = scmp.lt.u32.totalorder %s2067_s15, %s2237_s10 }
 0x2e7   : > { %p1452_p7 = scmp.lt.u32.totalorder %s1450_s4, %s1446_s0  ;;  %p1454_p9 = scmp.lt.u32.totalorder %s1446_s0, %s2067_s15 }
 0x2e8   : > { %p1448_p6 = pnand %p1447_p10, %p2238_p11 }
 0x2e9   : > { %p1453_p0 = por %p1452_p7, %p1451_p1 }
 0x2ea   : > { %p1449_p5 = pneg %p1448_p6 }
 0x2eb   : > { %p1455_p4 = por %p1454_p9, %p1453_p0 }
 0x2ed   : > { %p1456_p13 = pnand %p1455_p4, %p1449_p5 }
 0x2ef   : > { %1459 = shalt.err (!%p1456_p13)
}
 0x2f0   : > { %s1601_s14 = smov 64   ;;  %s1602_s5 = smov 4  }
 0x2f1   : > { %1130 = dma.vmem_to_hbm [thread:$0]  (%p2238_p11), %s2070_s30, 256, %s2067_s15, %s789_s11, %s1601_s14, %s1601_s14, %s1602_s5  }
 0x2f2 PF: > { %p1150_p12 = scmp.ge.s32.totalorder %s1590_s28, 2  ;;  %s817_s8 = sand.u32 1, %s1562_s21  }
 0x2f3   : > { %p2239_p3 = scmp.ne.s32.totalorder %s2208_s24, 0  ;;  %s818_s18 = scalar_lea.sflag [#allocation5], %s817_s8 }
 0x2f5   : > { %p1146_p8 = pnand %p1150_p12, %p2239_p3 }
 0x2f7   : > { %1533 = dma.done.wait (!%p1146_p8), %s818_s18, 256  }
 0x2f8   : > { %1535 = vsyncadd (!%p1146_p8), %s818_s18, 4294967040  ;;  %s26_s28 = sadd.s32 1, %s1590_s28   ;;  %s2241_s29 = sld [smem:[#allocation17_spill]] }
 0x2f9   : > { %p2101_p2 = scmp.ge.s32.totalorder %s26_s28, 10   ;;  %s2242_s17 = sld [smem:[#allocation30_spill]] }
 0x2fa   : > { %s2243_s27 = sld [smem:[#allocation28_spill]]  ;;  %s2244_s30 = sld [smem:[#allocation18_spill]] }
 0x2fb   : > { %s2245_s23 = sld [smem:[#allocation29_spill]]  ;;  %s2246_s25 = sld [smem:[#allocation21_spill]] }
 0x2fc   : > { %s2247_s11 = sld [smem:[#allocation26_spill]]  ;;  %s2248_s12 = sld [smem:[#allocation27_spill]] }
 0x2fd   : > { %s2249_s15 = smov %s1542_s16  ;;  %s2251_s18 = smov %s1554_s19 }
 0x2fe   : > { %s2250_s16 = smov %s2241_s29  ;;  %s2252_s19 = smov %s1558_s20 }
 0x2ff   : > { %s2254_s21 = smov %s1566_s22  ;;  %s2256_s24 = smov %s1582_s26 }
 0x300   : > { %s2253_s20 = smov %s2243_s27  ;;  %s2255_s22 = smov %s2244_s30 }
 0x301   :  { %25 = sbr.rel (!%p2101_p2) target bundleno = 20 (0x14), region = 126 }
 0x302   : > { %s2257_s26 = smov %s2247_s11  ;;  %s2258_s27 = smov %s2248_s12 }
 0x308   :  { %823 = vsyncpa [#allocation4], 1 }
 0x309   :  { %825 = vsyncpa [#allocation4 + $0x1], 1 }
 0x30a   :  { %826 = vsyncpa [#allocation7], 1 }
 0x30b   :  { %828 = vsyncpa [#allocation7 + $0x1], 1 }
 0x30c   :  { %829 = vsyncpa [#allocation10], 1 }
 0x30d   :  { %831 = vsyncpa [#allocation10 + $0x1], 1 }
 0x30e   :  { %832 = vsyncpa [#allocation5], 1 }
 0x30f   :  { %834 = vsyncpa [#allocation5 + $0x1], 1 }

</bundles_post_ra>
